<compile_context>
chip_gen: v7x
topology: tpu7x:2x2x1
jax: 0.10.0
libtpu: 0.0.40
codegen_flags: <defaults>
</compile_context>

<pallas_src>
import functools

import jax
import jax.numpy as jnp
from jax.experimental import pallas as pl
from jax.experimental.pallas import tpu as pltpu

# ------------------------- problem sizes ------------------------------------
OBS = 30          # observation features (x[:, :-2])
AUX = 2           # auxiliary vars (q, p) = x[:, -2:]
F = OBS + AUX     # total input features = 32
LAT = 2           # encoder latent dim
H_ENC = 32        # encoder hidden width
H_NA = 32         # NAFunc hidden width
NA_IN = AUX + LAT # NAFunc input dim = 4

TB = 128          # batch tile (rows per grid step)


# ------------------------- kernel -------------------------------------------
def conscinet_kernel(obs_ref, aux_ref,
                     we1_ref, be1_ref,
                     w_aux_ref, w_hz_ref, b_fused_ref,
                     wn2_ref, wn1_sympl_ref,
                     out_ref):
    obs = obs_ref[...]                                   # (TB, OBS)
    aux = aux_ref[...]                                   # (TB, AUX)

    # Encoder hidden layer: h = tanh(obs @ we1 + be1)
    h = jnp.tanh(
        jnp.dot(obs, we1_ref[...], preferred_element_type=jnp.float32)
        + be1_ref[...])                                  # (TB, H_ENC)

    # Fused NAFunc pre-activation:
    #   pre = aux @ wn1[:AUX] + h @ (we2 @ wn1[AUX:]) + (be2 @ wn1[AUX:] + bn1)
    pre = (jnp.dot(aux, w_aux_ref[...], preferred_element_type=jnp.float32)
           + jnp.dot(h, w_hz_ref[...], preferred_element_type=jnp.float32)
           + b_fused_ref[...])                           # (TB, H_NA)
    a = jnp.tanh(pre)                                    # (TB, H_NA)

    # dH/d(pre_k) = wn2_k * (1 - a_k^2)
    g = (1.0 - a * a) * wn2_ref[...]                     # (TB, H_NA)

    # out = [dH/dp, -dH/dq] with the symplectic permutation/negation
    # pre-baked into wn1_sympl: a single row-major matmul on the MXU.
    out_ref[...] = jnp.dot(g, wn1_sympl_ref[...],
                           preferred_element_type=jnp.float32)  # (TB, AUX)


# ------------------------- parameters ----------------------------------------
def make_params(key):
    ks = jax.random.split(key, 8)
    s = 0.2
    return dict(
        we1=s * jax.random.normal(ks[0], (OBS, H_ENC), jnp.float32),
        be1=s * jax.random.normal(ks[1], (1, H_ENC), jnp.float32),
        we2=s * jax.random.normal(ks[2], (H_ENC, LAT), jnp.float32),
        be2=s * jax.random.normal(ks[3], (1, LAT), jnp.float32),
        wn1=s * jax.random.normal(ks[4], (NA_IN, H_NA), jnp.float32),
        bn1=s * jax.random.normal(ks[5], (1, H_NA), jnp.float32),
        wn2=s * jax.random.normal(ks[6], (1, H_NA), jnp.float32),
        bn2=s * jax.random.normal(ks[7], (1, 1), jnp.float32),
    )


def fuse_params(params):
    """Offline algebraic folding (done once, outside the kernel)."""
    wn1 = params["wn1"]                                   # (NA_IN, H_NA)
    w_aux = wn1[:AUX, :]                                  # (AUX, H_NA)
    w_hz = params["we2"] @ wn1[AUX:, :]                   # (H_ENC, H_NA)
    b_fused = params["be2"] @ wn1[AUX:, :] + params["bn1"]  # (1, H_NA)
    # out col 0 =  dH/dp = g @ wn1[1, :] ; out col 1 = -dH/dq = -g @ wn1[0, :]
    wn1_sympl = jnp.stack([wn1[1, :], -wn1[0, :]], axis=1)  # (H_NA, AUX)
    return dict(
        we1=params["we1"], be1=params["be1"],
        w_aux=w_aux, w_hz=w_hz, b_fused=b_fused,
        wn2=params["wn2"], wn1_sympl=wn1_sympl,
    )


# ------------------------- wrapper -------------------------------------------
@jax.jit
def conscinet_forward(obs, aux, fused):
    b_total = obs.shape[0]
    nb = pl.cdiv(b_total, TB)
    b_pad = nb * TB
    if b_pad != b_total:
        obs = jnp.pad(obs, ((0, b_pad - b_total), (0, 0)))
        aux = jnp.pad(aux, ((0, b_pad - b_total), (0, 0)))

    # Activations tiled along batch; weights pinned (constant block index) so
    # they stay VMEM-resident across the whole grid.
    act_spec = lambda feat: pl.BlockSpec((TB, feat), lambda i: (i, 0))
    w_spec = lambda shape: pl.BlockSpec(shape, lambda i: (0, 0))

    out = pl.pallas_call(
        conscinet_kernel,
        grid=(nb,),
        in_specs=[
            act_spec(OBS),                 # obs
            act_spec(AUX),                 # aux
            w_spec((OBS, H_ENC)),          # we1
            w_spec((1, H_ENC)),            # be1
            w_spec((AUX, H_NA)),           # w_aux
            w_spec((H_ENC, H_NA)),         # w_hz
            w_spec((1, H_NA)),             # b_fused
            w_spec((1, H_NA)),             # wn2
            w_spec((H_NA, AUX)),           # wn1_sympl
        ],
        out_specs=act_spec(AUX),
        out_shape=jax.ShapeDtypeStruct((b_pad, AUX), jnp.float32),
        compiler_params=pltpu.CompilerParams(
            dimension_semantics=("parallel",)),
    )(obs, aux,
      fused["we1"], fused["be1"],
      fused["w_aux"], fused["w_hz"], fused["b_fused"],
      fused["wn2"], fused["wn1_sympl"])

    return out[:b_total]


# ------------------------- pure-JAX reference --------------------------------
def conscinet_reference(x, params):
    """Mirrors the PyTorch semantics (unfused weights, autodiff gradient)."""
    aux = x[:, OBS:F]
    obs = x[:, 0:OBS]
    h = jnp.tanh(obs @ params["we1"] + params["be1"])
    z = h @ params["we2"] + params["be2"]

    def hamiltonian(aux_row, z_row):
        na_in = jnp.concatenate([aux_row, z_row])
        a = jnp.tanh(na_in @ params["wn1"] + params["bn1"][0])
        return a @ params["wn2"][0] + params["bn2"][0, 0]

    dH = jax.vmap(jax.grad(hamiltonian, argnums=0))(aux, z)  # (B, 2)
    return jnp.stack([dH[:, 1], -dH[:, 0]], axis=1)


if __name__ == "__main__":
    key = jax.random.PRNGKey(0)
    kx, kp = jax.random.split(key)

    B = 256                                   # 2 batch tiles of TB=128
    x = jax.random.normal(kx, (B, F), jnp.float32)
    params = make_params(kp)
    fused = fuse_params(params)

    # Split obs / aux outside the kernel (free layout plumbing in XLA).
    obs = x[:, 0:OBS]
    aux = x[:, OBS:F]

    out = conscinet_forward(obs, aux, fused)
    out = jax.block_until_ready(out)

    ref = conscinet_reference(x, params)
    assert out.shape == (B, AUX)
    assert jnp.allclose(out, ref, atol=1e-4, rtol=1e-4), (out, ref)
    print("KERNEL_OK")
</pallas_src>

<mosaic_0001>
module attributes {stable_mosaic.version = 11 : i64} {
  func.func @conscinet_kernel(%arg0: i32, %arg1: memref<128x30xf32, #tpu.memory_space<vmem>>, %arg2: memref<128x2xf32, #tpu.memory_space<vmem>>, %arg3: memref<30x32xf32, #tpu.memory_space<vmem>>, %arg4: memref<1x32xf32, #tpu.memory_space<vmem>>, %arg5: memref<2x32xf32, #tpu.memory_space<vmem>>, %arg6: memref<32x32xf32, #tpu.memory_space<vmem>>, %arg7: memref<1x32xf32, #tpu.memory_space<vmem>>, %arg8: memref<1x32xf32, #tpu.memory_space<vmem>>, %arg9: memref<32x2xf32, #tpu.memory_space<vmem>>, %arg10: memref<128x2xf32, #tpu.memory_space<vmem>>) attributes {dimension_semantics = [#tpu.dimension_semantics<parallel>], iteration_bounds = array<i64: 2>, scalar_prefetch = 0 : i64, scratch_operands = 0 : i64, tpu.core_type = #tpu.core_type<tc>, window_params = [{transform_indices = @transform_0, window_bounds = array<i64: 128, 30>}, {transform_indices = @transform_1, window_bounds = array<i64: 128, 2>}, {pipeline_mode = #tpu.pipeline_mode<synchronous>, transform_indices = @transform_2, window_bounds = array<i64: 30, 32>}, {pipeline_mode = #tpu.pipeline_mode<synchronous>, transform_indices = @transform_3, window_bounds = array<i64: 1, 32>}, {pipeline_mode = #tpu.pipeline_mode<synchronous>, transform_indices = @transform_4, window_bounds = array<i64: 2, 32>}, {pipeline_mode = #tpu.pipeline_mode<synchronous>, transform_indices = @transform_5, window_bounds = array<i64: 32, 32>}, {pipeline_mode = #tpu.pipeline_mode<synchronous>, transform_indices = @transform_6, window_bounds = array<i64: 1, 32>}, {pipeline_mode = #tpu.pipeline_mode<synchronous>, transform_indices = @transform_7, window_bounds = array<i64: 1, 32>}, {pipeline_mode = #tpu.pipeline_mode<synchronous>, transform_indices = @transform_8, window_bounds = array<i64: 32, 2>}, {transform_indices = @transform_9, window_bounds = array<i64: 128, 2>}]} {
    %c0 = arith.constant 0 : index
    %c0_0 = arith.constant 0 : index
    %0 = vector.load %arg1[%c0, %c0_0] : memref<128x30xf32, #tpu.memory_space<vmem>>, vector<128x30xf32>
    %c0_1 = arith.constant 0 : index
    %c0_2 = arith.constant 0 : index
    %1 = vector.load %arg2[%c0_1, %c0_2] : memref<128x2xf32, #tpu.memory_space<vmem>>, vector<128x2xf32>
    %c0_3 = arith.constant 0 : index
    %c0_4 = arith.constant 0 : index
    %2 = vector.load %arg3[%c0_3, %c0_4] : memref<30x32xf32, #tpu.memory_space<vmem>>, vector<30x32xf32>
    %cst = arith.constant dense<0.000000e+00> : vector<128x32xf32>
    %3 = tpu.matmul %0, %2, %cst {dimension_numbers = #tpu.dot_dimension_numbers<[1], [0], [0], [1], [0, 0, 1, 1], [], []>} : vector<128x30xf32>, vector<30x32xf32>, vector<128x32xf32> -> vector<128x32xf32>
    %c0_5 = arith.constant 0 : index
    %c0_6 = arith.constant 0 : index
    %4 = vector.load %arg4[%c0_5, %c0_6] : memref<1x32xf32, #tpu.memory_space<vmem>>, vector<1x32xf32>
    %5 = vector.broadcast %4 : vector<1x32xf32> to vector<128x32xf32>
    %6 = arith.addf %3, %5 : vector<128x32xf32>
    %7 = math.tanh %6 : vector<128x32xf32>
    %c0_7 = arith.constant 0 : index
    %c0_8 = arith.constant 0 : index
    %8 = vector.load %arg5[%c0_7, %c0_8] : memref<2x32xf32, #tpu.memory_space<vmem>>, vector<2x32xf32>
    %cst_9 = arith.constant dense<0.000000e+00> : vector<128x32xf32>
    %9 = tpu.matmul %1, %8, %cst_9 {dimension_numbers = #tpu.dot_dimension_numbers<[1], [0], [0], [1], [0, 0, 1, 1], [], []>} : vector<128x2xf32>, vector<2x32xf32>, vector<128x32xf32> -> vector<128x32xf32>
    %c0_10 = arith.constant 0 : index
    %c0_11 = arith.constant 0 : index
    %10 = vector.load %arg6[%c0_10, %c0_11] : memref<32x32xf32, #tpu.memory_space<vmem>>, vector<32x32xf32>
    %cst_12 = arith.constant dense<0.000000e+00> : vector<128x32xf32>
    %11 = tpu.matmul %7, %10, %cst_12 {dimension_numbers = #tpu.dot_dimension_numbers<[1], [0], [0], [1], [0, 0, 1, 1], [], []>} : vector<128x32xf32>, vector<32x32xf32>, vector<128x32xf32> -> vector<128x32xf32>
    %12 = arith.addf %9, %11 : vector<128x32xf32>
    %c0_13 = arith.constant 0 : index
    %c0_14 = arith.constant 0 : index
    %13 = vector.load %arg7[%c0_13, %c0_14] : memref<1x32xf32, #tpu.memory_space<vmem>>, vector<1x32xf32>
    %14 = vector.broadcast %13 : vector<1x32xf32> to vector<128x32xf32>
    %15 = arith.addf %12, %14 : vector<128x32xf32>
    %16 = math.tanh %15 : vector<128x32xf32>
    %17 = arith.mulf %16, %16 : vector<128x32xf32>
    %cst_15 = arith.constant 1.000000e+00 : f32
    %18 = vector.broadcast %cst_15 : f32 to vector<128x32xf32>
    %19 = arith.subf %18, %17 : vector<128x32xf32>
    %c0_16 = arith.constant 0 : index
    %c0_17 = arith.constant 0 : index
    %20 = vector.load %arg8[%c0_16, %c0_17] : memref<1x32xf32, #tpu.memory_space<vmem>>, vector<1x32xf32>
    %21 = vector.broadcast %20 : vector<1x32xf32> to vector<128x32xf32>
    %22 = arith.mulf %19, %21 : vector<128x32xf32>
    %c0_18 = arith.constant 0 : index
    %c0_19 = arith.constant 0 : index
    %23 = vector.load %arg9[%c0_18, %c0_19] : memref<32x2xf32, #tpu.memory_space<vmem>>, vector<32x2xf32>
    %cst_20 = arith.constant dense<0.000000e+00> : vector<128x2xf32>
    %24 = tpu.matmul %22, %23, %cst_20 {dimension_numbers = #tpu.dot_dimension_numbers<[1], [0], [0], [1], [0, 0, 1, 1], [], []>} : vector<128x32xf32>, vector<32x2xf32>, vector<128x2xf32> -> vector<128x2xf32>
    %c0_21 = arith.constant 0 : index
    %c0_22 = arith.constant 0 : index
    %25 = vector.load %arg10[%c0_21, %c0_22] : memref<128x2xf32, #tpu.memory_space<vmem>>, vector<128x2xf32>
    tpu.vector_store %arg10[%c0_21, %c0_22], %24 {strides = array<i32>} : memref<128x2xf32, #tpu.memory_space<vmem>>, vector<128x2xf32>,
    return
  }
  func.func @transform_0(%arg0: i32) -> (i32, i32) {
    %c0_i32 = arith.constant 0 : i32
    %c0_i32_0 = arith.constant 0 : i32
    return %arg0, %c0_i32 : i32, i32
  }
  func.func @transform_1(%arg0: i32) -> (i32, i32) {
    %c0_i32 = arith.constant 0 : i32
    %c0_i32_0 = arith.constant 0 : i32
    return %arg0, %c0_i32 : i32, i32
  }
  func.func @transform_2(%arg0: i32) -> (i32, i32) {
    %c0_i32 = arith.constant 0 : i32
    %c0_i32_0 = arith.constant 0 : i32
    %c0_i32_1 = arith.constant 0 : i32
    return %c0_i32, %c0_i32_0 : i32, i32
  }
  func.func @transform_3(%arg0: i32) -> (i32, i32) {
    %c0_i32 = arith.constant 0 : i32
    %c0_i32_0 = arith.constant 0 : i32
    %c0_i32_1 = arith.constant 0 : i32
    return %c0_i32, %c0_i32_0 : i32, i32
  }
  func.func @transform_4(%arg0: i32) -> (i32, i32) {
    %c0_i32 = arith.constant 0 : i32
    %c0_i32_0 = arith.constant 0 : i32
    %c0_i32_1 = arith.constant 0 : i32
    return %c0_i32, %c0_i32_0 : i32, i32
  }
  func.func @transform_5(%arg0: i32) -> (i32, i32) {
    %c0_i32 = arith.constant 0 : i32
    %c0_i32_0 = arith.constant 0 : i32
    %c0_i32_1 = arith.constant 0 : i32
    return %c0_i32, %c0_i32_0 : i32, i32
  }
  func.func @transform_6(%arg0: i32) -> (i32, i32) {
    %c0_i32 = arith.constant 0 : i32
    %c0_i32_0 = arith.constant 0 : i32
    %c0_i32_1 = arith.constant 0 : i32
    return %c0_i32, %c0_i32_0 : i32, i32
  }
  func.func @transform_7(%arg0: i32) -> (i32, i32) {
    %c0_i32 = arith.constant 0 : i32
    %c0_i32_0 = arith.constant 0 : i32
    %c0_i32_1 = arith.constant 0 : i32
    return %c0_i32, %c0_i32_0 : i32, i32
  }
  func.func @transform_8(%arg0: i32) -> (i32, i32) {
    %c0_i32 = arith.constant 0 : i32
    %c0_i32_0 = arith.constant 0 : i32
    %c0_i32_1 = arith.constant 0 : i32
    return %c0_i32, %c0_i32_0 : i32, i32
  }
  func.func @transform_9(%arg0: i32) -> (i32, i32) {
    %c0_i32 = arith.constant 0 : i32
    %c0_i32_0 = arith.constant 0 : i32
    return %arg0, %c0_i32 : i32, i32
  }
}

</mosaic_0001>

<bundles_post_ra>
// kernel: conscinet_forward.1
= control target key start
LH: loop header
LB: loop body
LE: loop exit
PB: predicated region body
PF: predicated region fallthrough
CT: control target
= control target key end

     0   :  { %s1842_s30 = smov 0   ;;  %s2105_s0 = inlined_call_operand.vmem [shape: f32[256,30], index: 0, kind: input, shape index: {}]   ;;  %s2106_s1 = inlined_call_operand.vmem [shape: f32[256,2], index: 1, kind: input, shape index: {}]   ;;  %s2107_s2 = inlined_call_operand.vmem [shape: f32[30,32], index: 2, kind: input, shape index: {}]   ;;  %s2108_s3 = inlined_call_operand.vmem [shape: f32[1,32], index: 3, kind: input, shape index: {}]   ;;  %s2109_s4 = inlined_call_operand.vmem [shape: f32[2,32], index: 4, kind: input, shape index: {}]   ;;  %s2110_s5 = inlined_call_operand.vmem [shape: f32[32,32], index: 5, kind: input, shape index: {}]   ;;  %s2111_s6 = inlined_call_operand.vmem [shape: f32[1,32], index: 6, kind: input, shape index: {}]   ;;  %s2112_s7 = inlined_call_operand.vmem [shape: f32[1,32], index: 7, kind: input, shape index: {}]   ;;  %s2113_s8 = inlined_call_operand.vmem [shape: f32[32,2], index: 8, kind: input, shape index: {}]   ;;  %s2114_s9 = inlined_call_operand.vmem [shape: f32[256,2], index: 9, kind: output, shape index: {}]  }
   0x1 LB: > { %s1387_s10 = sadd.s32 4294967295, %s1789_s30   ;;  %p1391_p0 = scmp.ge.s32.totalorder %s1789_s30, 1  ;;  %s1789_s30 = sphi %s1842_s30, %s19_s30  }
   0x2   : > { %p299_p1 = scmp.lt.s32.totalorder %s1789_s30, 3 }
   0x4   : > { %p300_p2 = pnand %p1391_p0, %p299_p1 }
   0x5   : > { %v390_v0 = vld [vmem:[%s2107_s2] sm:$0xff] (!%p300_p2)  ;;  %v391_v1 = vld [vmem:[%s2107_s2 + $0x8] sm:$0xff] (!%p300_p2)  ;;  %v392_v2 = vld [vmem:[%s2107_s2 + $0x10] sm:$0xff] (!%p300_p2)  ;;  %vm450_vm0 = vcmask (!%p300_p2), 1045504   ;;  %s1392_s17 = sshll.u32 (!%p300_p2), %s1387_s10, 4  ;;  %vm1791_vm1 = vmmov (!%p300_p2), 1  }
   0x6   : > { %303 = sbr.rel (%p300_p2) target bundleno = 752 (0x2f0), region = 56  ;;  %v1668_v3 = vpack.c.bf16 (!%p300_p2), %v391_v1, %v390_v0  ;;  %v393_v4 = vld [vmem:[%s2107_s2 + $0x18] sm:$0x3f] (!%p300_p2)  ;;  %p341_p3 = scmp.lt.s32.totalorder (!%p300_p2), %s1392_s17, 31  ;;  %vm1673_vm2 = vmpackc.low (!%p300_p2), %vm450_vm0, %vm1791_vm1  ;;  %vm401_vm3 = vcmask (!%p300_p2), 244736   ;;  %v616_v22 = vld [vmem:[%s2110_s5] sm:$0xff] (!%p300_p2) }
   0x7   : > { %v1672_v5 = vpack.c.bf16 (!%p300_p2), %v393_v4, %v392_v2  ;;  %v617_v23 = vld [vmem:[%s2110_s5 + $0x8] sm:$0xff] (!%p300_p2)  ;;  %v618_v25 = vld [vmem:[%s2110_s5 + $0x10] sm:$0xff] (!%p300_p2)  ;;  %v619_v26 = vld [vmem:[%s2110_s5 + $0x18] sm:$0xff] (!%p300_p2)  ;;  %vm863_vm4 = vcmask (!%p300_p2), 1041408   ;;  %vm620_vm5 = vcmask (!%p300_p2), 261120   ;;  %vm814_vm6 = vcmask (!%p300_p2), 15360  }
   0x8   : > { %1669 = vmatprep.subr.bf16.mxu0 (!%p300_p2), %v1668_v3  ;;  %v1678_v24 = vpack.c.bf16 (!%p300_p2), %v617_v23, %v616_v22  ;;  %v1682_v27 = vpack.c.bf16 (!%p300_p2), %v619_v26, %v618_v25  ;;  %v615_v28 = vld [vmem:[%s2109_s4] sm:$0x3] (!%p300_p2)  ;;  %v1107_v30 = vld [vmem:[%s2113_s8 + $0x8] sm:$0xff] (!%p300_p2) }
   0x9   : > { %1671 = vmatpush3.bf16.msra.mxu0 (!%p300_p2), %v1668_v3  ;;  %v1106_v29 = vld [vmem:[%s2113_s8] sm:$0xff] (!%p300_p2) }
   0xa   : > { %1674 = vmatprep.subr.msk.bf16.mxu0 (!%p300_p2), %vm1673_vm2, %v1672_v5  ;;  %1679 = vmatprep.subr.bf16.mxu1 (!%p300_p2), %v1678_v24  ;;  %v1686_v31 = vpack.c.bf16 (!%p300_p2), %v1107_v30, %v1106_v29  ;;  %v1927_v32 = vld [vmem:[%s2108_s3] ss:$0 sm:$0xff] (!%p300_p2) }
   0xb   : > { %1681 = vmatpush3.bf16.msra.mxu1 (!%p300_p2), %v1678_v24 }
   0xc   : > { %1683 = vmatprep.subr.bf16.mxu1 (!%p300_p2), %v1682_v27 }
   0xd   : > { %s2116_s17 = smov (!%p341_p3, %s1392_s17), 31  ;;  %1677 = vmatpush3.bf16.msk.msra.mxu0 %vm1673_vm2, %v1672_v5 }
   0xe   : > { %s1862_s20 = sshll.u32 %s2116_s17, 3  ;;  %1687 = vmatprep.subr.bf16.mxu0 %v1686_v31 }
   0xf   : > { %s1868_s23 = scalar_lea.vmem %s2105_s0, %s1862_s20  ;;  %1685 = vmatpush3.bf16.msra.mxu1 %v1682_v27  ;;  %s2068_s14 = scalar_lea.vmem %s2114_s9, %s1862_s20 }
  0x10   : > { %v358_v6 = vld [vmem:[%s1868_s23] sm:$0xff]  ;;  %v359_v7 = vld [vmem:[%s1868_s23 + $0x8] sm:$0xff]  ;;  %v360_v8 = vld [vmem:[%s1868_s23 + $0x10] sm:$0xff]  ;;  %1610 = vmatprep.subr.msk.mxu1 %vm863_vm4, %v615_v28 }
  0x11   : > { %1554 = vmatprep.mubr.msk.f32.mxu0 %vm401_vm3, %v358_v6  ;;  %v361_v9 = vld [vmem:[%s1868_s23 + $0x18] sm:$0xff]  ;;  %v362_v10 = vld [vmem:[%s1868_s23 + $0x20] sm:$0xff]  ;;  %v363_v11 = vld [vmem:[%s1868_s23 + $0x28] sm:$0xff] }
  0x12   : > { %1555 = vmatmul.mubr.msk.f32.vlgmr.msra.gmra.mrb[0].mxu0 %vm401_vm3, %v359_v7  ;;  %v364_v12 = vld [vmem:[%s1868_s23 + $0x30] sm:$0xff]  ;;  %v365_v13 = vld [vmem:[%s1868_s23 + $0x38] sm:$0xff]  ;;  %v366_v14 = vld [vmem:[%s1868_s23 + $0x40] sm:$0xff] }
  0x13   : > { %1557 = vmatprep.mubr.msk.f32.mxu0 %vm401_vm3, %v360_v8  ;;  %v367_v15 = vld [vmem:[%s1868_s23 + $0x48] sm:$0xff]  ;;  %v368_v16 = vld [vmem:[%s1868_s23 + $0x50] sm:$0xff]  ;;  %v369_v17 = vld [vmem:[%s1868_s23 + $0x58] sm:$0xff]  ;;  %1689 = vmatpush3.bf16.msra.mxu0 %v1686_v31 }
  0x14   : > { %v370_v18 = vld [vmem:[%s1868_s23 + $0x60] sm:$0xff]  ;;  %v371_v19 = vld [vmem:[%s1868_s23 + $0x68] sm:$0xff]  ;;  %v372_v20 = vld [vmem:[%s1868_s23 + $0x70] sm:$0xff] }
  0x15   : > { %v373_v21 = vld [vmem:[%s1868_s23 + $0x78] sm:$0xff]  ;;  %s1963_s23 = scalar_lea.vmem %s2106_s1, %s1862_s20 }
  0x16   : > { %1558 = vmatmul.mubr.msk.f32.gmra.mrb[2].mxu0 %vm401_vm3, %v361_v9  ;;  %v379_v22 = vld [vmem:[%s1963_s23 + $0x28] sm:$0xff]  ;;  %v380_v23 = vld [vmem:[%s1963_s23 + $0x30] sm:$0xff]  ;;  %v381_v24 = vld [vmem:[%s1963_s23 + $0x38] sm:$0xff] }
  0x17   : > { %1560 = vmatprep.mubr.msk.f32.mxu0 %vm401_vm3, %v362_v10  ;;  %v382_v25 = vld [vmem:[%s1963_s23 + $0x40] sm:$0xff]  ;;  %v383_v26 = vld [vmem:[%s1963_s23 + $0x48] sm:$0xff]  ;;  %v384_v27 = vld [vmem:[%s1963_s23 + $0x50] sm:$0xff] }
  0x18   : > { %v386_v29 = vld [vmem:[%s1963_s23 + $0x60] sm:$0xff]  ;;  %v387_v30 = vld [vmem:[%s1963_s23 + $0x68] sm:$0xff]  ;;  %v388_v31 = vld [vmem:[%s1963_s23 + $0x70] sm:$0xff] }
  0x1a   : > { %1561 = vmatmul.mubr.msk.f32.gmra.mrb[4].mxu0 %vm401_vm3, %v363_v11 }
  0x1b   : > { %1563 = vmatprep.mubr.msk.f32.mxu0 %vm401_vm3, %v364_v12 }
  0x1e   : > { %1564 = vmatmul.mubr.msk.f32.gmra.mrb[6].mxu0 %vm401_vm3, %v365_v13 }
  0x1f   : > { %1566 = vmatprep.mubr.msk.f32.mxu0 %vm401_vm3, %v366_v14 }
  0x22   : > { %1567 = vmatmul.mubr.msk.f32.gmra.mrb[8].mxu0 %vm401_vm3, %v367_v15 }
  0x23   : > { %1569 = vmatprep.mubr.msk.f32.mxu0 %vm401_vm3, %v368_v16  ;;  %v374_v16 = vld [vmem:[%s1963_s23] sm:$0xff] }
  0x26   : > { %1570 = vmatmul.mubr.msk.f32.gmra.mrb[10].mxu0 %vm401_vm3, %v369_v17 }
  0x27   : > { %1572 = vmatprep.mubr.msk.f32.mxu0 %vm401_vm3, %v370_v18  ;;  %v375_v18 = vld [vmem:[%s1963_s23 + $0x8] sm:$0xff] }
  0x2a   : > { %1573 = vmatmul.mubr.msk.f32.gmra.mrb[12].mxu0 %vm401_vm3, %v371_v19  ;;  %v376_v19 = vld [vmem:[%s1963_s23 + $0x10] sm:$0xff] }
  0x2b   : > { %1575 = vmatprep.mubr.msk.f32.mxu0 %vm401_vm3, %v372_v20  ;;  %v377_v20 = vld [vmem:[%s1963_s23 + $0x18] sm:$0xff] }
  0x2e   : > { %1576 = vmatmul.mubr.msk.f32.gmra.mrb[14].mxu0 %vm401_vm3, %v373_v21  ;;  %v378_v21 = vld [vmem:[%s1963_s23 + $0x20] sm:$0xff] }
  0xe5   : > { %v1556_v33 = vpop.f32.mrb[0].mxu0 }
  0xe6   : > { %v526_v34 = vadd.f32 %v1556_v33, %v1927_v32  ;;  %v520_v35 = vpop.f32.mrb[1].mxu0  ;;  %v1108_v33 = vld [vmem:[%s2113_s8 + $0x10] sm:$0xff] }
  0xe7   : > { %v521_v36 = vadd.f32 %v1927_v32, %v520_v35 }
  0xe9   : > { %1719 = vtanh.f32 %v521_v36  ;;  %v1559_v37 = vpop.f32.mrb[2].mxu0  ;;  %v2009_v36 = vld [vmem:[%s2111_s6] ss:$0 sm:$0xff] }
  0xea   : > { %1721 = vtanh.f32 %v526_v34  ;;  %v536_v38 = vadd.f32 %v1559_v37, %v1927_v32  ;;  %v530_v39 = vpop.f32.mrb[3].mxu0  ;;  %v1109_v34 = vld [vmem:[%s2113_s8 + $0x18] sm:$0xff] }
  0xeb   : > { %v531_v40 = vadd.f32 %v1927_v32, %v530_v39  ;;  %v1690_v35 = vpack.c.bf16 %v1109_v34, %v1108_v33 }
  0xed   : > { %1723 = vtanh.f32 %v531_v40  ;;  %v1562_v41 = vpop.f32.mrb[4].mxu0  ;;  %1691 = vmatprep.subr.bf16.mxu0 %v1690_v35 }
  0xee   : > { %1725 = vtanh.f32 %v536_v38  ;;  %v546_v42 = vadd.f32 %v1562_v41, %v1927_v32  ;;  %v540_v43 = vpop.f32.mrb[5].mxu0  ;;  %1693 = vmatpush3.bf16.msra.mxu0 %v1690_v35 }
  0xef   : > { %v541_v44 = vadd.f32 %v1927_v32, %v540_v43 }
  0xf1   : > { %1727 = vtanh.f32 %v541_v44  ;;  %v1565_v45 = vpop.f32.mrb[6].mxu0 }
  0xf2   : > { %1729 = vtanh.f32 %v546_v42  ;;  %v556_v46 = vadd.f32 %v1565_v45, %v1927_v32  ;;  %v550_v47 = vpop.f32.mrb[7].mxu0 }
  0xf3   : > { %v1720_v48 = vpop.eup %1719  ;;  %v551_v49 = vadd.f32 %v1927_v32, %v550_v47 }
  0xf4   : > { %v1722_v50 = vpop.eup %1721  ;;  %1586 = vmatprep.mubr.msk.f32.mxu1 %vm620_vm5, %v1720_v48 }
  0xf5   : > { %1731 = vtanh.f32 %v551_v49  ;;  %v1568_v51 = vpop.f32.mrb[8].mxu0  ;;  %1587 = vmatmul.mubr.msk.f32.vlgmr.msra.gmra.mrb[0].mxu1 %vm620_vm5, %v1722_v50 }
  0xf6   : > { %1733 = vtanh.f32 %v556_v46  ;;  %v566_v52 = vadd.f32 %v1568_v51, %v1927_v32  ;;  %1611 = vmatpush3.msk.msra.mxu1 %vm863_vm4, %v615_v28  ;;  %v560_v53 = vpop.f32.mrb[9].mxu0  ;;  %v385_v28 = vld [vmem:[%s1963_s23 + $0x58] sm:$0xff] }
  0xf7   : > { %v1724_v54 = vpop.eup %1723  ;;  %v561_v55 = vadd.f32 %v1927_v32, %v560_v53 }
  0xf8   : > { %v1726_v56 = vpop.eup %1725  ;;  %1589 = vmatprep.mubr.msk.f32.mxu1 %vm620_vm5, %v1724_v54 }
  0xf9   : > { %1735 = vtanh.f32 %v561_v55  ;;  %v1571_v57 = vpop.f32.mrb[10].mxu0  ;;  %1590 = vmatmul.mubr.msk.f32.gmra.mrb[2].mxu1 %vm620_vm5, %v1726_v56 }
  0xfa   : > { %1737 = vtanh.f32 %v566_v52  ;;  %v576_v58 = vadd.f32 %v1571_v57, %v1927_v32  ;;  %v570_v59 = vpop.f32.mrb[11].mxu0 }
  0xfb   : > { %v1728_v60 = vpop.eup %1727  ;;  %v571_v61 = vadd.f32 %v1927_v32, %v570_v59 }
  0xfc   : > { %v1730_v62 = vpop.eup %1729  ;;  %1592 = vmatprep.mubr.msk.f32.mxu1 %vm620_vm5, %v1728_v60 }
  0xfd   : > { %1739 = vtanh.f32 %v571_v61  ;;  %v1574_v63 = vpop.f32.mrb[12].mxu0  ;;  %1593 = vmatmul.mubr.msk.f32.gmra.mrb[4].mxu1 %vm620_vm5, %v1730_v62 }
  0xfe   : > { %1741 = vtanh.f32 %v576_v58  ;;  %v586_v0 = vadd.f32 %v1574_v63, %v1927_v32  ;;  %v580_v1 = vpop.f32.mrb[13].mxu0  ;;  %v2022_v58 = vld [vmem:[%s2112_s7] ss:$0 sm:$0xff] }
  0xff   : > { %v1732_v2 = vpop.eup %1731  ;;  %v581_v3 = vadd.f32 %v1927_v32, %v580_v1 }
 0x100   : > { %v1734_v4 = vpop.eup %1733  ;;  %1595 = vmatprep.mubr.msk.f32.mxu1 %vm620_vm5, %v1732_v2 }
 0x101   : > { %1743 = vtanh.f32 %v581_v3  ;;  %v1577_v5 = vpop.f32.mrb[14].mxu0  ;;  %1596 = vmatmul.mubr.msk.f32.gmra.mrb[6].mxu1 %vm620_vm5, %v1734_v4 }
 0x102   : > { %1745 = vtanh.f32 %v586_v0  ;;  %v596_v6 = vadd.f32 %v1577_v5, %v1927_v32  ;;  %v590_v7 = vpop.f32.mrb[15].mxu0 }
 0x103   : > { %v1736_v8 = vpop.eup %1735  ;;  %v591_v9 = vadd.f32 %v1927_v32, %v590_v7  ;;  %v389_v32 = vld [vmem:[%s1963_s23 + $0x78] sm:$0xff] }
 0x104   : > { %v1738_v10 = vpop.eup %1737  ;;  %1598 = vmatprep.mubr.msk.f32.mxu1 %vm620_vm5, %v1736_v8 }
 0x105   : > { %1747 = vtanh.f32 %v591_v9  ;;  %1599 = vmatmul.mubr.msk.f32.gmra.mrb[8].mxu1 %vm620_vm5, %v1738_v10 }
 0x106   : > { %1749 = vtanh.f32 %v596_v6 }
 0x107   : > { %v1740_v11 = vpop.eup %1739 }
 0x108   : > { %v1742_v12 = vpop.eup %1741  ;;  %1601 = vmatprep.mubr.msk.f32.mxu1 %vm620_vm5, %v1740_v11 }
 0x109   : > { %1602 = vmatmul.mubr.msk.f32.gmra.mrb[10].mxu1 %vm620_vm5, %v1742_v12 }
 0x10b   : > { %v1744_v13 = vpop.eup %1743 }
 0x10c   : > { %v1746_v14 = vpop.eup %1745  ;;  %1604 = vmatprep.mubr.msk.f32.mxu1 %vm620_vm5, %v1744_v13 }
 0x10d   : > { %1605 = vmatmul.mubr.msk.f32.gmra.mrb[12].mxu1 %vm620_vm5, %v1746_v14 }
 0x10f   : > { %v1748_v15 = vpop.eup %1747 }
 0x110   : > { %v1750_v17 = vpop.eup %1749  ;;  %1607 = vmatprep.mubr.msk.f32.mxu1 %vm620_vm5, %v1748_v15 }
 0x111   : > { %1608 = vmatmul.mubr.msk.f32.gmra.mrb[14].mxu1 %vm620_vm5, %v1750_v17 }
 0x112   : > { %1612 = vmatprep.mubr.msk.f32.mxu1 %vm814_vm6, %v374_v16 }
 0x115   : > { %1613 = vmatmul.mubr.msk.f32.vlgmr.msra.gmra.mrb[0].mxu1 %vm814_vm6, %v375_v18 }
 0x116   : > { %1615 = vmatprep.mubr.msk.f32.mxu1 %vm814_vm6, %v376_v19 }
 0x119   : > { %1616 = vmatmul.mubr.msk.f32.gmra.mrb[2].mxu1 %vm814_vm6, %v377_v20 }
 0x11a   : > { %1618 = vmatprep.mubr.msk.f32.mxu1 %vm814_vm6, %v378_v21 }
 0x11d   : > { %1619 = vmatmul.mubr.msk.f32.gmra.mrb[4].mxu1 %vm814_vm6, %v379_v22 }
 0x11e   : > { %1621 = vmatprep.mubr.msk.f32.mxu1 %vm814_vm6, %v380_v23 }
 0x121   : > { %1622 = vmatmul.mubr.msk.f32.gmra.mrb[6].mxu1 %vm814_vm6, %v381_v24 }
 0x122   : > { %1624 = vmatprep.mubr.msk.f32.mxu1 %vm814_vm6, %v382_v25 }
 0x125   : > { %1625 = vmatmul.mubr.msk.f32.gmra.mrb[8].mxu1 %vm814_vm6, %v383_v26 }
 0x126   : > { %1627 = vmatprep.mubr.msk.f32.mxu1 %vm814_vm6, %v384_v27 }
 0x129   : > { %1628 = vmatmul.mubr.msk.f32.gmra.mrb[10].mxu1 %vm814_vm6, %v385_v28 }
 0x12a   : > { %1630 = vmatprep.mubr.msk.f32.mxu1 %vm814_vm6, %v386_v29 }
 0x12d   : > { %1631 = vmatmul.mubr.msk.f32.gmra.mrb[12].mxu1 %vm814_vm6, %v387_v30 }
 0x12e   : > { %1633 = vmatprep.mubr.msk.f32.mxu1 %vm814_vm6, %v388_v31 }
 0x131   : > { %1634 = vmatmul.mubr.msk.f32.gmra.mrb[14].mxu1 %vm814_vm6, %v389_v32 }
 0x1e8   : > { %v1614_v37 = vpop.f32.mrb[0].mxu1 }
 0x1e9   : > { %v1020_v38 = vadd.f32 %v1614_v37, %v2009_v36  ;;  %v933_v39 = vpop.f32.mrb[1].mxu1 }
 0x1ea   : > { %v1019_v40 = vadd.f32 %v2009_v36, %v933_v39 }
 0x1eb   : > { %1751 = vtanh.f32 %v1020_v38 }
 0x1ec   : > { %1753 = vtanh.f32 %v1019_v40  ;;  %v1617_v41 = vpop.f32.mrb[2].mxu1 }
 0x1ed   : > { %v1022_v42 = vadd.f32 %v1617_v41, %v2009_v36  ;;  %v943_v43 = vpop.f32.mrb[3].mxu1 }
 0x1ee   : > { %v1021_v44 = vadd.f32 %v2009_v36, %v943_v43 }
 0x1ef   : > { %1755 = vtanh.f32 %v1022_v42 }
 0x1f0   : > { %1757 = vtanh.f32 %v1021_v44  ;;  %v1620_v45 = vpop.f32.mrb[4].mxu1 }
 0x1f1   : > { %v1024_v46 = vadd.f32 %v1620_v45, %v2009_v36  ;;  %v953_v47 = vpop.f32.mrb[5].mxu1 }
 0x1f2   : > { %v1023_v48 = vadd.f32 %v2009_v36, %v953_v47 }
 0x1f3   : > { %1759 = vtanh.f32 %v1024_v46 }
 0x1f4   : > { %1761 = vtanh.f32 %v1023_v48  ;;  %v1623_v49 = vpop.f32.mrb[6].mxu1 }
 0x1f5   : > { %v1752_v50 = vpop.eup %1751  ;;  %v1026_v51 = vadd.f32 %v1623_v49, %v2009_v36  ;;  %v963_v52 = vpop.f32.mrb[7].mxu1 }
 0x1f6   : > { %v1754_v53 = vpop.eup %1753  ;;  %v1052_v54 = vmul.f32 %v1752_v50, %v1752_v50  ;;  %v1025_v55 = vadd.f32 %v2009_v36, %v963_v52 }
 0x1f7   : > { %v1051_v56 = vmul.f32 %v1754_v53, %v1754_v53  ;;  %1763 = vtanh.f32 %v1026_v51 }
 0x1f8   : > { %v1068_v57 = vsub.f32 1.0, %v1052_v54  ;;  %1765 = vtanh.f32 %v1025_v55  ;;  %v1626_v59 = vpop.f32.mrb[8].mxu1 }
 0x1f9   : > { %v1756_v60 = vpop.eup %1755  ;;  %v1067_v61 = vsub.f32 1.0, %v1051_v56  ;;  %v1028_v62 = vadd.f32 %v1626_v59, %v2009_v36  ;;  %v973_v63 = vpop.f32.mrb[9].mxu1 }
 0x1fa   : > { %v1758_v0 = vpop.eup %1757  ;;  %v1054_v1 = vmul.f32 %v1756_v60, %v1756_v60  ;;  %v1027_v2 = vadd.f32 %v2009_v36, %v973_v63  ;;  %v1091_v5 = vmul.f32 %v2022_v58, %v1068_v57 }
 0x1fb   : > { %v1090_v3 = vmul.f32 %v2022_v58, %v1067_v61  ;;  %v1053_v4 = vmul.f32 %v1758_v0, %v1758_v0  ;;  %1767 = vtanh.f32 %v1028_v62 }
 0x1fc   : > { %v1070_v6 = vsub.f32 1.0, %v1054_v1  ;;  %1769 = vtanh.f32 %v1027_v2  ;;  %v1629_v7 = vpop.f32.mrb[10].mxu1 }
 0x1fd   : > { %v1760_v8 = vpop.eup %1759  ;;  %v1069_v9 = vsub.f32 1.0, %v1053_v4  ;;  %v1030_v10 = vadd.f32 %v1629_v7, %v2009_v36  ;;  %v983_v11 = vpop.f32.mrb[11].mxu1  ;;  %1644 = vmatprep.mubr.msk.f32.mxu0 %vm620_vm5, %v1090_v3 }
 0x1fe   : > { %v1762_v12 = vpop.eup %1761  ;;  %v1056_v13 = vmul.f32 %v1760_v8, %v1760_v8  ;;  %v1029_v14 = vadd.f32 %v2009_v36, %v983_v11  ;;  %1645 = vmatmul.mubr.msk.f32.vlgmr.msra.gmra.mrb[16].mxu0 %vm620_vm5, %v1091_v5  ;;  %v1093_v17 = vmul.f32 %v2022_v58, %v1070_v6 }
 0x1ff   : > { %v1092_v15 = vmul.f32 %v2022_v58, %v1069_v9  ;;  %v1055_v16 = vmul.f32 %v1762_v12, %v1762_v12  ;;  %1771 = vtanh.f32 %v1030_v10 }
 0x200   : > { %v1072_v18 = vsub.f32 1.0, %v1056_v13  ;;  %1773 = vtanh.f32 %v1029_v14  ;;  %v1632_v19 = vpop.f32.mrb[12].mxu1 }
 0x201   : > { %v1764_v20 = vpop.eup %1763  ;;  %v1071_v21 = vsub.f32 1.0, %v1055_v16  ;;  %v1032_v22 = vadd.f32 %v1632_v19, %v2009_v36  ;;  %v993_v23 = vpop.f32.mrb[13].mxu1  ;;  %1647 = vmatprep.mubr.msk.f32.mxu0 %vm620_vm5, %v1092_v15 }
 0x202   : > { %v1766_v24 = vpop.eup %1765  ;;  %v1058_v25 = vmul.f32 %v1764_v20, %v1764_v20  ;;  %v1031_v26 = vadd.f32 %v2009_v36, %v993_v23  ;;  %1648 = vmatmul.mubr.msk.f32.gmra.mrb[18].mxu0 %vm620_vm5, %v1093_v17  ;;  %v1095_v29 = vmul.f32 %v2022_v58, %v1072_v18 }
 0x203   : > { %v1094_v27 = vmul.f32 %v2022_v58, %v1071_v21  ;;  %v1057_v28 = vmul.f32 %v1766_v24, %v1766_v24  ;;  %1775 = vtanh.f32 %v1032_v22 }
 0x204   : > { %v1074_v30 = vsub.f32 1.0, %v1058_v25  ;;  %1777 = vtanh.f32 %v1031_v26  ;;  %v1635_v31 = vpop.f32.mrb[14].mxu1 }
 0x205   : > { %v1768_v32 = vpop.eup %1767  ;;  %v1073_v33 = vsub.f32 1.0, %v1057_v28  ;;  %v1034_v34 = vadd.f32 %v1635_v31, %v2009_v36  ;;  %v1003_v35 = vpop.f32.mrb[15].mxu1  ;;  %1650 = vmatprep.mubr.msk.f32.mxu0 %vm620_vm5, %v1094_v27 }
 0x206   : > { %v1770_v37 = vpop.eup %1769  ;;  %v1060_v38 = vmul.f32 %v1768_v32, %v1768_v32  ;;  %v1033_v39 = vadd.f32 %v2009_v36, %v1003_v35  ;;  %1651 = vmatmul.mubr.msk.f32.gmra.mrb[20].mxu0 %vm620_vm5, %v1095_v29  ;;  %v1097_v42 = vmul.f32 %v2022_v58, %v1074_v30 }
 0x207   : > { %v1096_v40 = vmul.f32 %v2022_v58, %v1073_v33  ;;  %v1059_v41 = vmul.f32 %v1770_v37, %v1770_v37  ;;  %1779 = vtanh.f32 %v1034_v34 }
 0x208   : > { %v1076_v43 = vsub.f32 1.0, %v1060_v38  ;;  %1781 = vtanh.f32 %v1033_v39 }
 0x209   : > { %v1772_v44 = vpop.eup %1771  ;;  %v1075_v45 = vsub.f32 1.0, %v1059_v41  ;;  %1653 = vmatprep.mubr.msk.f32.mxu0 %vm620_vm5, %v1096_v40 }
 0x20a   : > { %v1774_v46 = vpop.eup %1773  ;;  %v1062_v47 = vmul.f32 %v1772_v44, %v1772_v44  ;;  %1654 = vmatmul.mubr.msk.f32.gmra.mrb[22].mxu0 %vm620_vm5, %v1097_v42  ;;  %v1099_v49 = vmul.f32 %v2022_v58, %v1076_v43 }
 0x20b   : > { %v1098_v36 = vmul.f32 %v2022_v58, %v1075_v45  ;;  %v1061_v48 = vmul.f32 %v1774_v46, %v1774_v46 }
 0x20c   : > { %v1078_v50 = vsub.f32 1.0, %v1062_v47 }
 0x20d   : > { %v1776_v51 = vpop.eup %1775  ;;  %v1077_v52 = vsub.f32 1.0, %v1061_v48  ;;  %1656 = vmatprep.mubr.msk.f32.mxu0 %vm620_vm5, %v1098_v36 }
 0x20e   : > { %v1778_v53 = vpop.eup %1777  ;;  %v1064_v54 = vmul.f32 %v1776_v51, %v1776_v51  ;;  %1657 = vmatmul.mubr.msk.f32.gmra.mrb[24].mxu0 %vm620_vm5, %v1099_v49  ;;  %v1101_v57 = vmul.f32 %v2022_v58, %v1078_v50 }
 0x20f   : > { %v1100_v55 = vmul.f32 %v2022_v58, %v1077_v52  ;;  %v1063_v56 = vmul.f32 %v1778_v53, %v1778_v53 }
 0x210   : > { %v1080_v59 = vsub.f32 1.0, %v1064_v54 }
 0x211   : > { %v1780_v60 = vpop.eup %1779  ;;  %v1079_v61 = vsub.f32 1.0, %v1063_v56  ;;  %1659 = vmatprep.mubr.msk.f32.mxu0 %vm620_vm5, %v1100_v55 }
 0x212   : > { %v1782_v62 = vpop.eup %1781  ;;  %v1066_v63 = vmul.f32 %v1780_v60, %v1780_v60  ;;  %1660 = vmatmul.mubr.msk.f32.gmra.mrb[26].mxu0 %vm620_vm5, %v1101_v57  ;;  %v1103_v2 = vmul.f32 %v2022_v58, %v1080_v59 }
 0x213   : > { %v1102_v0 = vmul.f32 %v2022_v58, %v1079_v61  ;;  %v1065_v1 = vmul.f32 %v1782_v62, %v1782_v62 }
 0x214   : > { %v1082_v3 = vsub.f32 1.0, %v1066_v63 }
 0x215   : > { %v1081_v4 = vsub.f32 1.0, %v1065_v1  ;;  %1662 = vmatprep.mubr.msk.f32.mxu0 %vm620_vm5, %v1102_v0 }
 0x216   : > { %1663 = vmatmul.mubr.msk.f32.gmra.mrb[28].mxu0 %vm620_vm5, %v1103_v2  ;;  %v1105_v6 = vmul.f32 %v2022_v58, %v1082_v3 }
 0x217   : > { %v1104_v5 = vmul.f32 %v2022_v58, %v1081_v4 }
 0x219   : > { %1665 = vmatprep.mubr.msk.f32.mxu0 %vm620_vm5, %v1104_v5 }
 0x21a   : > { %1666 = vmatmul.mubr.msk.f32.gmra.mrb[30].mxu0 %vm620_vm5, %v1105_v6 }
 0x2d1   : > { %v1646_v7 = vpop.f32.mrb[16].mxu0 }
 0x2d2   : > { %1304 = vst.msk [vmem:[%s2068_s14 + $0x8] sm:$0xff] %vm814_vm6, %v1646_v7  ;;  %v1224_v58 = vpop.f32.mrb[17].mxu0 }
 0x2d3   : > { %1303 = vst.msk [vmem:[%s2068_s14] sm:$0xff] %vm814_vm6, %v1224_v58 }
 0x2d5   : > { %v1649_v8 = vpop.f32.mrb[18].mxu0 }
 0x2d6   : > { %1306 = vst.msk [vmem:[%s2068_s14 + $0x18] sm:$0xff] %vm814_vm6, %v1649_v8  ;;  %v1234_v9 = vpop.f32.mrb[19].mxu0 }
 0x2d7   : > { %1305 = vst.msk [vmem:[%s2068_s14 + $0x10] sm:$0xff] %vm814_vm6, %v1234_v9 }
 0x2d9   : > { %v1652_v10 = vpop.f32.mrb[20].mxu0 }
 0x2da   : > { %1308 = vst.msk [vmem:[%s2068_s14 + $0x28] sm:$0xff] %vm814_vm6, %v1652_v10  ;;  %v1244_v11 = vpop.f32.mrb[21].mxu0 }
 0x2db   : > { %1307 = vst.msk [vmem:[%s2068_s14 + $0x20] sm:$0xff] %vm814_vm6, %v1244_v11 }
 0x2dd   : > { %v1655_v12 = vpop.f32.mrb[22].mxu0 }
 0x2de   : > { %1310 = vst.msk [vmem:[%s2068_s14 + $0x38] sm:$0xff] %vm814_vm6, %v1655_v12  ;;  %v1254_v13 = vpop.f32.mrb[23].mxu0 }
 0x2df   : > { %1309 = vst.msk [vmem:[%s2068_s14 + $0x30] sm:$0xff] %vm814_vm6, %v1254_v13 }
 0x2e1   : > { %v1658_v14 = vpop.f32.mrb[24].mxu0 }
 0x2e2   : > { %1312 = vst.msk [vmem:[%s2068_s14 + $0x48] sm:$0xff] %vm814_vm6, %v1658_v14  ;;  %v1264_v15 = vpop.f32.mrb[25].mxu0 }
 0x2e3   : > { %1311 = vst.msk [vmem:[%s2068_s14 + $0x40] sm:$0xff] %vm814_vm6, %v1264_v15 }
 0x2e5   : > { %v1661_v16 = vpop.f32.mrb[26].mxu0 }
 0x2e6   : > { %1314 = vst.msk [vmem:[%s2068_s14 + $0x58] sm:$0xff] %vm814_vm6, %v1661_v16  ;;  %v1274_v17 = vpop.f32.mrb[27].mxu0 }
 0x2e7   : > { %1313 = vst.msk [vmem:[%s2068_s14 + $0x50] sm:$0xff] %vm814_vm6, %v1274_v17 }
 0x2e9   : > { %v1664_v18 = vpop.f32.mrb[28].mxu0 }
 0x2ea   : > { %1316 = vst.msk [vmem:[%s2068_s14 + $0x68] sm:$0xff] %vm814_vm6, %v1664_v18  ;;  %v1284_v19 = vpop.f32.mrb[29].mxu0 }
 0x2eb   : > { %1315 = vst.msk [vmem:[%s2068_s14 + $0x60] sm:$0xff] %vm814_vm6, %v1284_v19 }
 0x2ed   : > { %v1667_v20 = vpop.f32.mrb[30].mxu0 }
 0x2ee   : > { %1318 = vst.msk [vmem:[%s2068_s14 + $0x78] sm:$0xff] %vm814_vm6, %v1667_v20  ;;  %v1294_v21 = vpop.f32.mrb[31].mxu0 }
 0x2ef   : > { %1317 = vst.msk [vmem:[%s2068_s14 + $0x70] sm:$0xff] %vm814_vm6, %v1294_v21 }
 0x2f0 PF: > { %s19_s30 = sadd.s32 1, %s1789_s30  }
 0x2f1   : > { %p16_p4 = scmp.ge.s32.totalorder %s19_s30, 4  }
 0x2f3   :  { %18 = sbr.rel (!%p16_p4) target bundleno = 1 (0x1), region = 89 }

</bundles_post_ra>
